<compile_context>
chip_gen: v6e
topology: v6e:2x2x1
jax: 0.10.0
libtpu: 0.0.40
codegen_flags: <defaults>
</compile_context>

<pallas_src>
import functools

import jax
import jax.numpy as jnp
from jax.experimental import pallas as pl
from jax.experimental.pallas import tpu as pltpu

LANES = 128
SUBLANES = 8


def _loss_kernel(pred_ref, tru_ref, out_ref, *, rows, tile_rows, needs_mask):
    """Per-block partial sum of (pred - tru)^2 / (tru + 1).

    pred_ref, tru_ref: (tile_rows, 128) VMEM tiles (native dtype)
    out_ref:           (1, 128) VMEM lane-dense partial-sum output block
    """
    p = pred_ref[...].astype(jnp.float32)
    t = tru_ref[...].astype(jnp.float32)

    if needs_mask:
        # Last block may read past the end of the (rows, 128) slab; zero out
        # out-of-range rows before computing so garbage never reaches the sum.
        i = pl.program_id(0)
        row_ids = i * tile_rows + jax.lax.broadcasted_iota(
            jnp.int32, (tile_rows, LANES), 0
        )
        mask = row_ids < rows
        p = jnp.where(mask, p, 0.0)
        t = jnp.where(mask, t, 0.0)

    diff = p - t
    # Exact reciprocal keeps the 1e-5/1e-6 tolerance; division leaves the VALU
    # slot free-er but the kernel is memory-bound either way.
    val = diff * diff * pl.reciprocal(t + 1.0, approx=False)

    if tile_rows % SUBLANES == 0:
        # Pure-VPU fold of (tile_rows, 128) -> (8, 128), then one cheap
        # cross-sublane reduce to (1, 128).
        folded = val.reshape(tile_rows // SUBLANES, SUBLANES, LANES).sum(axis=0)
    else:
        # Small single-block case (rows < 8 or not sublane aligned).
        folded = val
    out_ref[...] = jnp.sum(folded, axis=0, keepdims=True)


def custom_loss(pred, tru, *, tile_rows=2048):
    """mean((pred - tru)^2 / (tru + 1)) computed in a Pallas TPU kernel."""
    assert pred.shape == tru.shape, "pred and tru must have the same shape"
    n = int(pred.size)

    pf = pred.reshape(-1)
    tf = tru.reshape(-1)

    rem = n % LANES
    if rem:
        # TODO(synk): this tail pad copies the flat arrays; it is only hit when
        # numel % 128 != 0 (pad values 0 contribute (0-0)^2/(0+1) = 0).
        pad = LANES - rem
        pf = jnp.pad(pf, (0, pad))
        tf = jnp.pad(tf, (0, pad))

    rows = pf.shape[0] // LANES
    P = pf.reshape(rows, LANES)
    T = tf.reshape(rows, LANES)

    # Block sizing: full array if it fits in one block, otherwise a 2048-row
    # (1 MiB f32 per input) block; the tail block is masked in-kernel.
    tr = rows if rows <= tile_rows else tile_rows
    num_blocks = pl.cdiv(rows, tr)
    needs_mask = (num_blocks * tr) != rows

    itemsize = jnp.dtype(pred.dtype).itemsize

    partials = pl.pallas_call(
        functools.partial(
            _loss_kernel, rows=rows, tile_rows=tr, needs_mask=needs_mask
        ),
        out_shape=jax.ShapeDtypeStruct((num_blocks, LANES), jnp.float32),
        grid_spec=pltpu.PrefetchScalarGridSpec(
            num_scalar_prefetch=0,
            grid=(num_blocks,),
            in_specs=[
                pl.BlockSpec((tr, LANES), lambda i: (i, 0)),
                pl.BlockSpec((tr, LANES), lambda i: (i, 0)),
            ],
            out_specs=pl.BlockSpec((1, LANES), lambda i: (i, 0)),
        ),
        compiler_params=pltpu.CompilerParams(
            dimension_semantics=("parallel",),  # independent partial sums
        ),
        cost_estimate=pl.CostEstimate(
            flops=4 * n,
            transcendentals=0,
            bytes_accessed=2 * n * itemsize + num_blocks * LANES * 4,
        ),
    )(P, T)

    # Tiny final reduction + mean outside the kernel (divide by true count).
    return jnp.sum(partials) / n


if __name__ == "__main__":
    key = jax.random.PRNGKey(0)
    k_pred, k_tru = jax.random.split(key)

    # Small NCHW-shaped inputs consistent with a conv-style model output.
    B, C, H, W = 2, 4, 16, 16
    pred = jax.random.normal(k_pred, (B, C, H, W), dtype=jnp.float32)
    tru = jax.random.uniform(k_tru, (B, C, H, W), dtype=jnp.float32)  # tru + 1 > 0

    loss = custom_loss(pred, tru)
    loss = jax.block_until_ready(loss)

    # Reference check in plain JAX.
    ref = jnp.mean((pred - tru) ** 2 / (tru + 1.0))
    assert jnp.allclose(loss, ref, rtol=1e-5, atol=1e-6), (loss, ref)

    print("KERNEL_OK")
</pallas_src>

<mosaic_0001>
module attributes {stable_mosaic.version = 11 : i64} {
  func.func @_loss_kernel(%arg0: i32, %arg1: memref<16x128xf32, #tpu.memory_space<vmem>>, %arg2: memref<16x128xf32, #tpu.memory_space<vmem>>, %arg3: memref<1x128xf32, #tpu.memory_space<vmem>>) attributes {dimension_semantics = [#tpu.dimension_semantics<parallel>], iteration_bounds = array<i64: 1>, scalar_prefetch = 0 : i64, scratch_operands = 0 : i64, tpu.core_type = #tpu.core_type<tc>, window_params = [{transform_indices = @transform_0, window_bounds = array<i64: 16, 128>}, {transform_indices = @transform_1, window_bounds = array<i64: 16, 128>}, {transform_indices = @transform_2, window_bounds = array<i64: 1, 128>}]} {
    %c0 = arith.constant 0 : index
    %c0_0 = arith.constant 0 : index
    %0 = vector.load %arg1[%c0, %c0_0] : memref<16x128xf32, #tpu.memory_space<vmem>>, vector<16x128xf32>
    %c0_1 = arith.constant 0 : index
    %c0_2 = arith.constant 0 : index
    %1 = vector.load %arg2[%c0_1, %c0_2] : memref<16x128xf32, #tpu.memory_space<vmem>>, vector<16x128xf32>
    %2 = arith.subf %0, %1 : vector<16x128xf32>
    %3 = arith.mulf %2, %2 : vector<16x128xf32>
    %cst = arith.constant 1.000000e+00 : f32
    %4 = vector.broadcast %cst : f32 to vector<16x128xf32>
    %5 = arith.addf %1, %4 : vector<16x128xf32>
    %6 = tpu.reciprocal %5 : vector<16x128xf32> -> vector<16x128xf32>
    %7 = arith.mulf %3, %6 : vector<16x128xf32>
    %8 = vector.shape_cast %7 : vector<16x128xf32> to vector<2x8x128xf32>
    %cst_3 = arith.constant dense<0.000000e+00> : vector<8x128xf32>
    %9 = vector.multi_reduction <add>, %8, %cst_3 [0] : vector<2x8x128xf32> to vector<8x128xf32>
    %cst_4 = arith.constant dense<0.000000e+00> : vector<128xf32>
    %10 = vector.multi_reduction <add>, %9, %cst_4 [0] : vector<8x128xf32> to vector<128xf32>
    %11 = vector.shape_cast %10 : vector<128xf32> to vector<1x128xf32>
    %c0_5 = arith.constant 0 : index
    %c0_6 = arith.constant 0 : index
    %12 = vector.load %arg3[%c0_5, %c0_6] : memref<1x128xf32, #tpu.memory_space<vmem>>, vector<1x128xf32>
    tpu.vector_store %arg3[%c0_5, %c0_6], %11 {strides = array<i32>} : memref<1x128xf32, #tpu.memory_space<vmem>>, vector<1x128xf32>,
    return
  }
  func.func @transform_0(%arg0: i32) -> (i32, i32) {
    %c0_i32 = arith.constant 0 : i32
    %c0_i32_0 = arith.constant 0 : i32
    return %arg0, %c0_i32 : i32, i32
  }
  func.func @transform_1(%arg0: i32) -> (i32, i32) {
    %c0_i32 = arith.constant 0 : i32
    %c0_i32_0 = arith.constant 0 : i32
    return %arg0, %c0_i32 : i32, i32
  }
  func.func @transform_2(%arg0: i32) -> (i32, i32) {
    %c0_i32 = arith.constant 0 : i32
    %c0_i32_0 = arith.constant 0 : i32
    return %arg0, %c0_i32 : i32, i32
  }
}

</mosaic_0001>

<bundles_post_ra>
// kernel: tpu_custom_call.1
= control target key start
LH: loop header
LB: loop body
LE: loop exit
PB: predicated region body
PF: predicated region fallthrough
CT: control target
= control target key end

     0   :  { %7 = vsyncpa [#allocation3], 0  ;;  %s182_s0 = inlined_call_operand.hbm [shape: f32[16,128], index: 0, kind: input, shape index: {}]   ;;  %s183_s1 = inlined_call_operand.hbm [shape: f32[16,128], index: 1, kind: input, shape index: {}]   ;;  %s184_s2 = inlined_call_operand.hbm [shape: f32[1,128], index: 2, kind: output, shape index: {}]  }
   0x1   :  { %8 = vsyncpa [#allocation6], 0 }
   0x2   :  { %9 = vsyncpa [#allocation4], 0  ;;  %s153_s9 = smov [#allocation2]  }
   0x3   :  { %s15_s10 = sshll.u32 %s153_s9, 4  ;;  %s16_s10 = int_to_ptr.vmem [resolvable:$true] %s15_s10 }
   0x4   :  { %s95_s11 = scalar_lea.vmem %s16_s10, 256  ;;  %p100_p1 = scmp.lt.s32.totalorder %s16_s10, %s16_s10 }
   0x5   :  { %p96_p0 = scmp.ne.s32.totalorder %s16_s10, %s95_s11  ;;  %p101_p2 = scmp.lt.s32.totalorder %s95_s11, %s95_s11 }
   0x7   :  { %p102_p3 = por %p101_p2, %p100_p1 }
   0x9   :  { %p103_p4 = pnand %p102_p3, %p96_p0 }
   0xb   :  { %106 = shalt.err (!%p103_p4)
}
   0xc   :  { %s154_s12 = smov 128   ;;  %s155_s13 = smov 8  }
   0xd   :  { %21 = dma.hbm_to_vmem [thread:$0]  %s182_s0, 256, %s16_s10, [#allocation3], %s154_s12, %s154_s12, %s155_s13  }
   0xe   :  { %s156_s16 = smov [#allocation5]  }
   0xf   :  { %s27_s17 = sshll.u32 %s156_s16, 4  ;;  %s28_s17 = int_to_ptr.vmem [resolvable:$true] %s27_s17 }
  0x10   :  { %s115_s18 = scalar_lea.vmem %s28_s17, 256  ;;  %p120_p6 = scmp.lt.s32.totalorder %s28_s17, %s28_s17 }
  0x11   :  { %p116_p5 = scmp.ne.s32.totalorder %s28_s17, %s115_s18  ;;  %p121_p7 = scmp.lt.s32.totalorder %s115_s18, %s115_s18 }
  0x13   :  { %p122_p8 = por %p121_p7, %p120_p6 }
  0x15   :  { %p123_p9 = pnand %p122_p8, %p116_p5 }
  0x17   :  { %126 = shalt.err (!%p123_p9)
}
  0x18   :  { %33 = dma.hbm_to_vmem [thread:$0]  %s183_s1, 256, %s28_s17, [#allocation6], %s154_s12, %s154_s12, %s155_s13  }
  0x19   :  { %147 = dma.done.wait [#allocation3], 256  }
  0x1a   :  { %148 = vsyncadd [#allocation3], 4294967040 }
  0x1b   :  { %149 = dma.done.wait [#allocation6], 256  }
  0x1c   :  { %150 = vsyncadd [#allocation6], 4294967040  ;;  %v42_v0 = vld [vmem:[#allocation5] sm:$0xff]  ;;  %v43_v1 = vld [vmem:[#allocation5 + $0x8] sm:$0xff]  ;;  %s157_s0 = smov [#allocation7]  }
  0x1d   :  { %v48_v2 = vadd.f32 1.0, %v42_v0  ;;  %v49_v3 = vadd.f32 1.0, %v43_v1  ;;  %v40_v4 = vld [vmem:[#allocation2] sm:$0xff]  ;;  %v41_v5 = vld [vmem:[#allocation2 + $0x8] sm:$0xff]  ;;  %s68_s1 = sshll.u32 %s157_s0, 4  ;;  %s69_s1 = int_to_ptr.vmem [resolvable:$true] %s68_s1 }
  0x1e   :  { %v44_v6 = vsub.f32 %v40_v4, %v42_v0  ;;  %v45_v7 = vsub.f32 %v41_v5, %v43_v1  ;;  %s127_s21 = scalar_lea.vmem %s69_s1, 16  ;;  %s131_s22 = scalar_lea.vmem %s69_s1, 32 }
  0x1f   :  { %83 = vrcp.f32 %v48_v2  ;;  %p128_p10 = scmp.ne.s32.totalorder %s69_s1, %s127_s21  ;;  %p132_p11 = scmp.lt.s32.totalorder %s69_s1, %s69_s1 }
  0x20   :  { %85 = vrcp.f32 %v49_v3  ;;  %v46_v8 = vmul.f32 %v44_v6, %v44_v6  ;;  %v47_v9 = vmul.f32 %v45_v7, %v45_v7  ;;  %p133_p12 = scmp.lt.s32.totalorder %s131_s22, %s127_s21 }
  0x22   :  { %p134_p13 = por %p133_p12, %p132_p11 }
  0x24   :  { %p135_p0 = pnand %p134_p13, %p128_p10 }
  0x2c   :  { %v84_v10 = vpop.eup %83 }
  0x2d   :  { %v86_v11 = vpop.eup %85  ;;  %v52_v12 = vmul.f32 %v84_v10, %v46_v8 }
  0x2e   :  { %v53_v13 = vmul.f32 %v86_v11, %v47_v9 }
  0x30   :  { %v54_v14 = vadd.f32 %v53_v13, %v52_v12 }
  0x32   :  { %v55_v15 = vrot.slane %v54_v14, 4 }
  0x34   :  { %v56_v16 = vadd.f32 %v55_v15, %v54_v14 }
  0x36   :  { %v57_v17 = vrot.slane %v56_v16, 2 }
  0x38   :  { %v58_v18 = vadd.f32 %v57_v17, %v56_v16 }
  0x3a   :  { %v59_v19 = vrot.slane %v58_v18, 1 }
  0x3c   :  { %v60_v20 = vadd.f32 %v59_v19, %v58_v18 }
  0x3e   :  { %61 = vst [vmem:[#allocation7] sm:$0x1] %v60_v20 }
  0x3f   :  { %138 = shalt.err (!%p135_p0)
}
  0x40   :  { %71 = dma.vmem_to_hbm [thread:$0]  %s69_s1, 16, %s184_s2, [#allocation4]  }
  0x41   :  { %151 = dma.done.wait [#allocation4], 16  }
  0x42   :  { %152 = vsyncadd [#allocation4], 4294967280 }
  0x43   :  { %75 = vsyncpa [#allocation3], 1 }
  0x44   :  { %76 = vsyncpa [#allocation6], 1 }
  0x45   :  { %77 = vsyncpa [#allocation4], 1 }

</bundles_post_ra>
